<compile_context>
chip_gen: v7x
topology: tpu7x:2x2x1
jax: 0.10.0
libtpu: 0.0.40
codegen_flags: <defaults>
</compile_context>

<pallas_src>
import functools
import math

import jax
import jax.numpy as jnp
from jax.experimental import pallas as pl
from jax.experimental.pallas import tpu as pltpu

C_CAP = 1024                      # max lane width of a block (multiple of F*Q)
BLOCK_BYTES_CAP = 2 * 1024 * 1024  # ~2 MiB per (TR, C) input block
TARGET_GRID_STEPS = 4              # aim for >= this many grid steps when possible


def _round_up(a, b):
    return ((a + b - 1) // b) * b


def _cdiv(a, b):
    return (a + b - 1) // b


# ---------------------------------------------------------------- kernel ----
def _modrelu_kernel(x_ref, b_ref, o_ref, *, group):
    # x_ref/o_ref: (TR, C); b_ref: (1, C).  Lane l belongs to quaternion group l // group.
    x = x_ref[...].astype(jnp.float32)
    b = b_ref[...].astype(jnp.float32)
    c = x.shape[-1]

    sq = x * x
    lane = jax.lax.broadcasted_iota(jnp.int32, x.shape, x.ndim - 1)

    # In-register segmented reduction: after log2(group) butterfly stages every
    # lane holds the sum of squares of its aligned group of `group` lanes.
    # Rolls are lane rotations (XLU slot, free next to the DMAs); wrapped lanes
    # are never selected because groups are `group`-aligned and group | C.
    s = sq
    dist = 1
    while dist < group:
        fwd = pltpu.roll(s, shift=c - dist, axis=1)   # lane l -> s[l + dist]
        bwd = pltpu.roll(s, shift=dist, axis=1)       # lane l -> s[l - dist]
        s = s + jnp.where((lane % (2 * dist)) < dist, fwd, bwd)
        dist *= 2

    norm = jnp.sqrt(s)
    # Exact divide kept on purpose: the kernel is HBM-bandwidth-bound, so the
    # EUP/VPU divide is fully hidden; pl.reciprocal(approx=True) would only
    # trade accuracy for nothing here.
    scale = jnp.maximum(norm + b, 0.0) / (norm + 1e-6)
    o_ref[...] = (x * scale).astype(o_ref.dtype)


# --------------------------------------------------------------- wrapper ----
@jax.jit
def modrelu_forward(x, bias):
    """Pallas ModReLU forward. x: (..., features, Q), bias: (features,)."""
    assert x.ndim >= 2, "ModReLU expects at least 2 dims (features, components)"
    features = bias.shape[0]
    assert x.shape[-2] == features, "x.shape[-2] must equal `features`"
    q = x.shape[-1]
    assert q & (q - 1) == 0, "component count must be a power of two"
    # TODO(synk): support non-power-of-two trailing dims (pad the group reduction).

    lead = int(math.prod(x.shape[:-2]))
    fq = features * q

    # Lane width C: a multiple of F*Q (so quaternion groups and the bias
    # pattern are row-invariant), grown by powers of two while it divides lead.
    k = 1
    while lead % (2 * k) == 0 and 2 * k * fq <= C_CAP:
        k *= 2
    c = k * fq
    r = lead // k                      # total rows; r * c == x.size
    assert c % fq == 0 and c % q == 0

    # Rows per block: multiple of 8 (or full dim), block <= ~2 MiB, and small
    # enough to give >= TARGET_GRID_STEPS steps when r allows.
    row_bytes = c * x.dtype.itemsize
    tr_cap = max(8, (BLOCK_BYTES_CAP // row_bytes) // 8 * 8)
    tr = min(r, tr_cap, _round_up(max(_cdiv(r, TARGET_GRID_STEPS), 1), 8))
    grid = (_cdiv(r, tr),)

    # One (1, C) bias row: lane l -> bias[(l // q) % features].  DMA'd once and
    # kept VMEM-resident via the constant index_map below.
    bias_row = jnp.tile(jnp.repeat(bias.astype(jnp.float32), q), c // fq).reshape(1, c)

    # Pure collapse of contiguous dims -- no transpose / data shuffling.
    # TODO(synk): in a full model, keep activations in this flattened layout
    # (or fuse this reshape with the producer) so it costs nothing.
    x2 = x.reshape(r, c)

    out2 = pl.pallas_call(
        functools.partial(_modrelu_kernel, group=q),
        out_shape=jax.ShapeDtypeStruct((r, c), x.dtype),
        grid=grid,
        in_specs=[
            pl.BlockSpec((tr, c), lambda i: (i, 0)),   # streamed x rows
            pl.BlockSpec((1, c), lambda i: (0, 0)),    # resident bias row
        ],
        out_specs=pl.BlockSpec((tr, c), lambda i: (i, 0)),
        compiler_params=pltpu.CompilerParams(
            dimension_semantics=("parallel",),
            vmem_limit_bytes=32 * 1024 * 1024,
        ),
    )(x2, bias_row)

    return out2.reshape(x.shape)


class ModReLU:
    """Pallas port of the PyTorch ModReLU module."""

    def __init__(self, features):
        self.features = features
        # nn.Parameter(torch.zeros(features))
        self.bias = jnp.zeros((features,), jnp.float32)

    def __call__(self, x):
        return modrelu_forward(x, self.bias)


# --------------------------------------------------------------- reference --
def _reference(x, bias):
    norm = jnp.linalg.norm(x.astype(jnp.float32), axis=-1)
    scale = jax.nn.relu(norm + bias) / (norm + 1e-6)
    return (x * scale[..., None]).astype(x.dtype)


# ------------------------------------------------------------------ main ----
if __name__ == "__main__":
    key = jax.random.PRNGKey(0)
    kx, kb = jax.random.split(key)

    # (batch=2, seq=8, features=32, quaternion components=4)
    B, S, F, Q = 2, 8, 32, 4
    x = jax.random.normal(kx, (B, S, F, Q), dtype=jnp.float32)

    ok = True

    # default init: zero bias (matches nn.Parameter(torch.zeros(features)))
    mod = ModReLU(features=F)
    y0 = jax.block_until_ready(mod(x))
    ref0 = _reference(x, mod.bias)
    ok &= y0.shape == x.shape and bool(jnp.allclose(y0, ref0, atol=1e-5, rtol=1e-5))

    # non-trivial (learned) bias to exercise the relu / rescale path
    mod.bias = 0.5 * jax.random.normal(kb, (F,), dtype=jnp.float32)
    y1 = jax.block_until_ready(mod(x))
    ref1 = _reference(x, mod.bias)
    ok &= bool(jnp.allclose(y1, ref1, atol=1e-5, rtol=1e-5))

    if ok:
        print("KERNEL_OK")
    else:
        raise SystemExit("mismatch vs reference")
</pallas_src>

<mosaic_0001>
module attributes {stable_mosaic.version = 11 : i64} {
  func.func @_modrelu_kernel(%arg0: i32, %arg1: memref<2x1024xf32, #tpu.memory_space<vmem>>, %arg2: memref<1x1024xf32, #tpu.memory_space<vmem>>, %arg3: memref<2x1024xf32, #tpu.memory_space<vmem>>) attributes {dimension_semantics = [#tpu.dimension_semantics<parallel>], iteration_bounds = array<i64: 1>, scalar_prefetch = 0 : i64, scratch_operands = 0 : i64, tpu.core_type = #tpu.core_type<tc>, window_params = [{transform_indices = @transform_0, window_bounds = array<i64: 2, 1024>}, {pipeline_mode = #tpu.pipeline_mode<synchronous>, transform_indices = @transform_1, window_bounds = array<i64: 1, 1024>}, {transform_indices = @transform_2, window_bounds = array<i64: 2, 1024>}]} {
    %c0 = arith.constant 0 : index
    %c0_0 = arith.constant 0 : index
    %0 = vector.load %arg1[%c0, %c0_0] : memref<2x1024xf32, #tpu.memory_space<vmem>>, vector<2x1024xf32>
    %c0_1 = arith.constant 0 : index
    %c0_2 = arith.constant 0 : index
    %1 = vector.load %arg2[%c0_1, %c0_2] : memref<1x1024xf32, #tpu.memory_space<vmem>>, vector<1x1024xf32>
    %2 = arith.mulf %0, %0 : vector<2x1024xf32>
    %3 = tpu.iota {dimensions = array<i32: 1>} : vector<2x1024xi32>
    %c1023_i32 = arith.constant 1023 : i32
    %4 = tpu.dynamic_rotate %2 by %c1023_i32 dim 1 : vector<2x1024xf32>, i32 -> vector<2x1024xf32>
    %c1_i32 = arith.constant 1 : i32
    %5 = tpu.dynamic_rotate %2 by %c1_i32 dim 1 : vector<2x1024xf32>, i32 -> vector<2x1024xf32>
    %c2_i32 = arith.constant 2 : i32
    %c0_i32 = arith.constant 0 : i32
    %6 = arith.cmpi eq, %c2_i32, %c0_i32 : i32
    %c1_i32_3 = arith.constant 1 : i32
    %7 = arith.select %6, %c1_i32_3, %c2_i32 : i32
    %8 = vector.broadcast %7 : i32 to vector<2x1024xi32>
    %9 = arith.remsi %3, %8 : vector<2x1024xi32>
    %c0_i32_4 = arith.constant 0 : i32
    %10 = vector.broadcast %c0_i32_4 : i32 to vector<2x1024xi32>
    %11 = arith.cmpi ne, %9, %10 : vector<2x1024xi32>
    %c0_i32_5 = arith.constant 0 : i32
    %12 = vector.broadcast %c0_i32_5 : i32 to vector<2x1024xi32>
    %13 = arith.cmpi slt, %9, %12 : vector<2x1024xi32>
    %c0_i32_6 = arith.constant 0 : i32
    %14 = arith.cmpi slt, %7, %c0_i32_6 : i32
    %15 = vector.broadcast %14 : i1 to vector<2x1024xi1>
    %16 = vector.broadcast %15 : vector<2x1024xi1> to vector<2x1024xi1>
    %17 = arith.xori %13, %16 : vector<2x1024xi1>
    %18 = arith.andi %17, %11 : vector<2x1024xi1>
    %19 = vector.broadcast %7 : i32 to vector<2x1024xi32>
    %20 = arith.addi %9, %19 : vector<2x1024xi32>
    %21 = arith.select %18, %20, %9 : vector<2x1024xi1>, vector<2x1024xi32>
    %c1_i32_7 = arith.constant 1 : i32
    %22 = vector.broadcast %c1_i32_7 : i32 to vector<2x1024xi32>
    %23 = arith.cmpi slt, %21, %22 : vector<2x1024xi32>
    %24 = arith.select %23, %4, %5 : vector<2x1024xi1>, vector<2x1024xf32>
    %25 = arith.addf %2, %24 : vector<2x1024xf32>
    %c1022_i32 = arith.constant 1022 : i32
    %26 = tpu.dynamic_rotate %25 by %c1022_i32 dim 1 : vector<2x1024xf32>, i32 -> vector<2x1024xf32>
    %c2_i32_8 = arith.constant 2 : i32
    %27 = tpu.dynamic_rotate %25 by %c2_i32_8 dim 1 : vector<2x1024xf32>, i32 -> vector<2x1024xf32>
    %c4_i32 = arith.constant 4 : i32
    %c0_i32_9 = arith.constant 0 : i32
    %28 = arith.cmpi eq, %c4_i32, %c0_i32_9 : i32
    %c1_i32_10 = arith.constant 1 : i32
    %29 = arith.select %28, %c1_i32_10, %c4_i32 : i32
    %30 = vector.broadcast %29 : i32 to vector<2x1024xi32>
    %31 = arith.remsi %3, %30 : vector<2x1024xi32>
    %c0_i32_11 = arith.constant 0 : i32
    %32 = vector.broadcast %c0_i32_11 : i32 to vector<2x1024xi32>
    %33 = arith.cmpi ne, %31, %32 : vector<2x1024xi32>
    %c0_i32_12 = arith.constant 0 : i32
    %34 = vector.broadcast %c0_i32_12 : i32 to vector<2x1024xi32>
    %35 = arith.cmpi slt, %31, %34 : vector<2x1024xi32>
    %c0_i32_13 = arith.constant 0 : i32
    %36 = arith.cmpi slt, %29, %c0_i32_13 : i32
    %37 = vector.broadcast %36 : i1 to vector<2x1024xi1>
    %38 = vector.broadcast %37 : vector<2x1024xi1> to vector<2x1024xi1>
    %39 = arith.xori %35, %38 : vector<2x1024xi1>
    %40 = arith.andi %39, %33 : vector<2x1024xi1>
    %41 = vector.broadcast %29 : i32 to vector<2x1024xi32>
    %42 = arith.addi %31, %41 : vector<2x1024xi32>
    %43 = arith.select %40, %42, %31 : vector<2x1024xi1>, vector<2x1024xi32>
    %c2_i32_14 = arith.constant 2 : i32
    %44 = vector.broadcast %c2_i32_14 : i32 to vector<2x1024xi32>
    %45 = arith.cmpi slt, %43, %44 : vector<2x1024xi32>
    %46 = arith.select %45, %26, %27 : vector<2x1024xi1>, vector<2x1024xf32>
    %47 = arith.addf %25, %46 : vector<2x1024xf32>
    %48 = math.sqrt %47 : vector<2x1024xf32>
    %49 = vector.broadcast %1 : vector<1x1024xf32> to vector<2x1024xf32>
    %50 = arith.addf %48, %49 : vector<2x1024xf32>
    %cst = arith.constant 0.000000e+00 : f32
    %51 = vector.broadcast %cst : f32 to vector<2x1024xf32>
    %52 = arith.maximumf %50, %51 : vector<2x1024xf32>
    %cst_15 = arith.constant 9.99999997E-7 : f32
    %53 = vector.broadcast %cst_15 : f32 to vector<2x1024xf32>
    %54 = arith.addf %48, %53 : vector<2x1024xf32>
    %55 = arith.divf %52, %54 : vector<2x1024xf32>
    %56 = arith.mulf %0, %55 : vector<2x1024xf32>
    %c0_16 = arith.constant 0 : index
    %c0_17 = arith.constant 0 : index
    %57 = vector.load %arg3[%c0_16, %c0_17] : memref<2x1024xf32, #tpu.memory_space<vmem>>, vector<2x1024xf32>
    tpu.vector_store %arg3[%c0_16, %c0_17], %56 {strides = array<i32>} : memref<2x1024xf32, #tpu.memory_space<vmem>>, vector<2x1024xf32>,
    return
  }
  func.func @transform_0(%arg0: i32) -> (i32, i32) {
    %c0_i32 = arith.constant 0 : i32
    %c0_i32_0 = arith.constant 0 : i32
    return %arg0, %c0_i32 : i32, i32
  }
  func.func @transform_1(%arg0: i32) -> (i32, i32) {
    %c0_i32 = arith.constant 0 : i32
    %c0_i32_0 = arith.constant 0 : i32
    %c0_i32_1 = arith.constant 0 : i32
    return %c0_i32, %c0_i32_0 : i32, i32
  }
  func.func @transform_2(%arg0: i32) -> (i32, i32) {
    %c0_i32 = arith.constant 0 : i32
    %c0_i32_0 = arith.constant 0 : i32
    return %arg0, %c0_i32 : i32, i32
  }
}

</mosaic_0001>

<bundles_post_ra>
// kernel: tile.6
= control target key start
LH: loop header
LB: loop body
LE: loop exit
PB: predicated region body
PF: predicated region fallthrough
CT: control target
= control target key end

     0   :  { %s22_s0 = inlined_call_operand.vmem [shape: f32[128], index: 0, kind: input, shape index: {}]   ;;  %s23_s1 = inlined_call_operand.vmem [shape: f32[8,128], index: 1, kind: output, shape index: {}]  }
   0x1   :  { %v4_v0 = vld [vmem:[%s22_s0] ss:$0 sm:$0xff] }
   0x2   :  { %5 = vst [vmem:[%s23_s1] sm:$0xff] %v4_v0 }

// kernel: tile.5
= control target key start
LH: loop header
LB: loop body
LE: loop exit
PB: predicated region body
PF: predicated region fallthrough
CT: control target
= control target key end

     0   :  { %s259_s10 = smov 124   ;;  %s260_s11 = smov 116   ;;  %vm3_vm0 = vcmask 31744   ;;  %vm9_vm1 = vcmask 1048544   ;;  %vm15_vm2 = vcmask 1015744   ;;  %vm21_vm3 = vcmask 982944   ;;  %s399_s0 = inlined_call_operand.vmem [shape: f32[32,4], index: 0, kind: input, shape index: {}]   ;;  %s400_s1 = inlined_call_operand.vmem [shape: f32[128], index: 1, kind: output, shape index: {}]  }
   0x1   :  { %v197_v0 = vld [vmem:[%s399_s0 + $0x1f] sm:$0x1]   ;;  %v199_v1 = vld [vmem:[%s399_s0 + $0x1d] sm:$0x1]   ;;  %v198_v2 = vld [vmem:[%s399_s0 + $0x1e] sm:$0x1]  }
   0x2   :  { %7 = vrot.lane.b32.xlu0 %v197_v0, %s259_s10  ;;  %19 = vrot.lane.b32.xlu1 %v199_v1, %s260_s11  ;;  %v200_v3 = vld [vmem:[%s399_s0 + $0x1c] sm:$0x1]   ;;  %s261_s16 = smov 120   ;;  %s262_s17 = smov 112   ;;  %v201_v4 = vld [vmem:[%s399_s0 + $0x1b] sm:$0x1]  }
   0x3   :  { %v202_v5 = vld [vmem:[%s399_s0 + $0x1a] sm:$0x1]   ;;  %s263_s22 = smov 108   ;;  %s264_s23 = smov 104   ;;  %v203_v6 = vld [vmem:[%s399_s0 + $0x19] sm:$0x1]  }
   0x4   :  { %v204_v7 = vld [vmem:[%s399_s0 + $0x18] sm:$0x1]   ;;  %s265_s28 = smov 100   ;;  %s266_s29 = smov 96   ;;  %v205_v8 = vld [vmem:[%s399_s0 + $0x17] sm:$0x1]  }
   0x5   :  { %v206_v9 = vld [vmem:[%s399_s0 + $0x16] sm:$0x1]   ;;  %v2_v10 = vld [vmem:[%s399_s0] sm:$0x1]   ;;  %s267_s7 = smov 92   ;;  %s268_s8 = smov 88  }
   0x6   :  { %13 = vrot.lane.b32.xlu0 %v198_v2, %s261_s16  ;;  %25 = vrot.lane.b32.xlu1 %v200_v3, %s262_s17  ;;  %4 = vst.msk [vmem:[#allocation0] sm:$0x1] %vm3_vm0, %v2_v10   ;;  %v207_v11 = vld [vmem:[%s399_s0 + $0x15] sm:$0x1]   ;;  %v208_v12 = vld [vmem:[%s399_s0 + $0x14] sm:$0x1]  }
   0x7   :  { %s269_s13 = smov 84   ;;  %s270_s14 = smov 80   ;;  %v209_v13 = vld [vmem:[%s399_s0 + $0x13] sm:$0x1]   ;;  %v210_v14 = vld [vmem:[%s399_s0 + $0x12] sm:$0x1]  }
   0x8   :  { %s271_s19 = smov 76   ;;  %s272_s20 = smov 72   ;;  %v211_v15 = vld [vmem:[%s399_s0 + $0x11] sm:$0x1]   ;;  %v212_v16 = vld [vmem:[%s399_s0 + $0x10] sm:$0x1]  }
   0x9   :  { %s273_s25 = smov 68   ;;  %s274_s26 = smov 64   ;;  %v213_v17 = vld [vmem:[%s399_s0 + $0xf] sm:$0x1]   ;;  %v214_v18 = vld [vmem:[%s399_s0 + $0xe] sm:$0x1]  }
   0xa   :  { %31 = vrot.lane.b32.xlu0 %v201_v4, %s263_s22  ;;  %37 = vrot.lane.b32.xlu1 %v202_v5, %s264_s23  ;;  %s275_s2 = smov 60   ;;  %s276_s3 = smov 56   ;;  %v215_v19 = vld [vmem:[%s399_s0 + $0xd] sm:$0x1]   ;;  %v216_v20 = vld [vmem:[%s399_s0 + $0xc] sm:$0x1]  }
   0xb   :  { %s278_s9 = smov 48   ;;  %v217_v21 = vld [vmem:[%s399_s0 + $0xb] sm:$0x1]   ;;  %v218_v22 = vld [vmem:[%s399_s0 + $0xa] sm:$0x1]   ;;  %s280_s15 = smov 40  }
   0xc   :  { %v219_v23 = vld [vmem:[%s399_s0 + $0x9] sm:$0x1]   ;;  %v220_v24 = vld [vmem:[%s399_s0 + $0x8] sm:$0x1]   ;;  %s282_s21 = smov 32   ;;  %s284_s27 = smov 24  }
   0xd   :  { %v221_v25 = vld [vmem:[%s399_s0 + $0x7] sm:$0x1]   ;;  %v222_v26 = vld [vmem:[%s399_s0 + $0x6] sm:$0x1]   ;;  %v223_v27 = vld [vmem:[%s399_s0 + $0x5] sm:$0x1]  }
   0xe   :  { %43 = vrot.lane.b32.xlu0 %v203_v6, %s265_s28  ;;  %49 = vrot.lane.b32.xlu1 %v204_v7, %s266_s29  ;;  %v224_v28 = vld [vmem:[%s399_s0 + $0x4] sm:$0x1]   ;;  %s286_s4 = smov 16   ;;  %v225_v29 = vld [vmem:[%s399_s0 + $0x3] sm:$0x1]   ;;  %s288_s10 = smov 8  }
   0xf   :  { %v226_v30 = vld [vmem:[%s399_s0 + $0x2] sm:$0x1]   ;;  %v227_v31 = vld [vmem:[%s399_s0 + $0x1] sm:$0x1]   ;;  %s289_s0 = smov 4   ;;  %vm27_vm4 = vcmask 950144  }
  0x10   :  { %vm33_vm5 = vcmask 917344   ;;  %vm39_vm6 = vcmask 884544   ;;  %vm45_vm7 = vcmask 851744   ;;  %vm51_vm8 = vcmask 818944  }
  0x11   :  { %vm57_vm9 = vcmask 786144   ;;  %vm63_vm10 = vcmask 753344   ;;  %vm69_vm11 = vcmask 720544   ;;  %vm75_vm12 = vcmask 687744  }
  0x12   :  { %55 = vrot.lane.b32.xlu0 %v205_v8, %s267_s7  ;;  %61 = vrot.lane.b32.xlu1 %v206_v9, %s268_s8  ;;  %s277_s8 = smov 52   ;;  %vm81_vm13 = vcmask 654944   ;;  %vm87_vm14 = vcmask 622144   ;;  %vm93_vm15 = vcmask 589344   ;;  %vm99_vm0 = vcmask 556544  }
  0x16   :  { %67 = vrot.lane.b32.xlu0 %v207_v11, %s269_s13  ;;  %73 = vrot.lane.b32.xlu1 %v208_v12, %s270_s14  ;;  %s279_s14 = smov 44  }
  0x1a   :  { %79 = vrot.lane.b32.xlu0 %v209_v13, %s271_s19  ;;  %85 = vrot.lane.b32.xlu1 %v210_v14, %s272_s20  ;;  %s281_s20 = smov 36  }
  0x1e   :  { %91 = vrot.lane.b32.xlu0 %v211_v15, %s273_s25  ;;  %97 = vrot.lane.b32.xlu1 %v212_v16, %s274_s26  ;;  %s283_s26 = smov 28  }
  0x22   :  { %103 = vrot.lane.b32.xlu0 %v213_v17, %s275_s2  ;;  %109 = vrot.lane.b32.xlu1 %v214_v18, %s276_s3  ;;  %s285_s3 = smov 20  }
  0x26   :  { %115 = vrot.lane.b32.xlu0 %v215_v19, %s277_s8  ;;  %121 = vrot.lane.b32.xlu1 %v216_v20, %s278_s9  ;;  %s287_s9 = smov 12  }
  0x2a   :  { %127 = vrot.lane.b32.xlu0 %v217_v21, %s279_s14  ;;  %133 = vrot.lane.b32.xlu1 %v218_v22, %s280_s15 }
  0x2e   :  { %139 = vrot.lane.b32.xlu0 %v219_v23, %s281_s20  ;;  %145 = vrot.lane.b32.xlu1 %v220_v24, %s282_s21 }
  0x32   :  { %151 = vrot.lane.b32.xlu0 %v221_v25, %s283_s26  ;;  %157 = vrot.lane.b32.xlu1 %v222_v26, %s284_s27 }
  0x36   :  { %163 = vrot.lane.b32.xlu0 %v223_v27, %s285_s3  ;;  %169 = vrot.lane.b32.xlu1 %v224_v28, %s286_s4 }
  0x3a   :  { %175 = vrot.lane.b32.xlu0 %v225_v29, %s287_s9  ;;  %181 = vrot.lane.b32.xlu1 %v226_v30, %s288_s10 }
  0x3e   :  { %187 = vrot.lane.b32.xlu0 %v227_v31, %s289_s0 }
  0x74   :  { %v8_v32 = vpop.permute.xlu0 %7   ;;  %v20_v33 = vpop.permute.xlu1 %19  }
  0x75   :  { %10 = vst.msk [vmem:[#allocation0] sm:$0x1] %vm9_vm1, %v8_v32   ;;  %vm105_vm1 = vcmask 523744  }
  0x78   :  { %v14_v34 = vpop.permute.xlu0 %13   ;;  %v26_v35 = vpop.permute.xlu1 %25  }
  0x79   :  { %16 = vst.msk [vmem:[#allocation0] sm:$0x1] %vm15_vm2, %v14_v34   ;;  %vm111_vm2 = vcmask 490944  }
  0x7a   :  { %22 = vst.msk [vmem:[#allocation0] sm:$0x1] %vm21_vm3, %v20_v33   ;;  %vm117_vm3 = vcmask 458144  }
  0x7b   :  { %28 = vst.msk [vmem:[#allocation0] sm:$0x1] %vm27_vm4, %v26_v35   ;;  %vm123_vm4 = vcmask 425344  }
  0x7c   :  { %v32_v36 = vpop.permute.xlu0 %31   ;;  %v38_v37 = vpop.permute.xlu1 %37  }
  0x7d   :  { %34 = vst.msk [vmem:[#allocation0] sm:$0x1] %vm33_vm5, %v32_v36   ;;  %vm129_vm5 = vcmask 392544  }
  0x7e   :  { %40 = vst.msk [vmem:[#allocation0] sm:$0x1] %vm39_vm6, %v38_v37   ;;  %vm135_vm6 = vcmask 359744  }
  0x80   :  { %v44_v38 = vpop.permute.xlu0 %43   ;;  %v50_v39 = vpop.permute.xlu1 %49  }
  0x81   :  { %46 = vst.msk [vmem:[#allocation0] sm:$0x1] %vm45_vm7, %v44_v38   ;;  %vm141_vm7 = vcmask 326944  }
  0x82   :  { %52 = vst.msk [vmem:[#allocation0] sm:$0x1] %vm51_vm8, %v50_v39   ;;  %vm147_vm8 = vcmask 294144  }
  0x84   :  { %v56_v40 = vpop.permute.xlu0 %55   ;;  %v62_v41 = vpop.permute.xlu1 %61  }
  0x85   :  { %58 = vst.msk [vmem:[#allocation0] sm:$0x1] %vm57_vm9, %v56_v40   ;;  %vm153_vm9 = vcmask 261344  }
  0x86   :  { %64 = vst.msk [vmem:[#allocation0] sm:$0x1] %vm63_vm10, %v62_v41   ;;  %vm159_vm10 = vcmask 228544  }
  0x88   :  { %v68_v42 = vpop.permute.xlu0 %67   ;;  %v74_v43 = vpop.permute.xlu1 %73  }
  0x89   :  { %70 = vst.msk [vmem:[#allocation0] sm:$0x1] %vm69_vm11, %v68_v42   ;;  %vm165_vm11 = vcmask 195744  }
  0x8a   :  { %76 = vst.msk [vmem:[#allocation0] sm:$0x1] %vm75_vm12, %v74_v43   ;;  %vm171_vm12 = vcmask 162944  }
  0x8c   :  { %v80_v44 = vpop.permute.xlu0 %79   ;;  %v86_v45 = vpop.permute.xlu1 %85  }
  0x8d   :  { %82 = vst.msk [vmem:[#allocation0] sm:$0x1] %vm81_vm13, %v80_v44   ;;  %vm177_vm13 = vcmask 130144  }
  0x8e   :  { %88 = vst.msk [vmem:[#allocation0] sm:$0x1] %vm87_vm14, %v86_v45   ;;  %vm183_vm14 = vcmask 97344  }
  0x90   :  { %v92_v46 = vpop.permute.xlu0 %91   ;;  %v98_v47 = vpop.permute.xlu1 %97  }
  0x91   :  { %94 = vst.msk [vmem:[#allocation0] sm:$0x1] %vm93_vm15, %v92_v46   ;;  %vm189_vm15 = vcmask 64544  }
  0x92   :  { %100 = vst.msk [vmem:[#allocation0] sm:$0x1] %vm99_vm0, %v98_v47  }
  0x94   :  { %v104_v48 = vpop.permute.xlu0 %103   ;;  %v110_v49 = vpop.permute.xlu1 %109  }
  0x95   :  { %106 = vst.msk [vmem:[#allocation0] sm:$0x1] %vm105_vm1, %v104_v48  }
  0x96   :  { %112 = vst.msk [vmem:[#allocation0] sm:$0x1] %vm111_vm2, %v110_v49  }
  0x98   :  { %v116_v50 = vpop.permute.xlu0 %115   ;;  %v122_v51 = vpop.permute.xlu1 %121  }
  0x99   :  { %118 = vst.msk [vmem:[#allocation0] sm:$0x1] %vm117_vm3, %v116_v50  }
  0x9a   :  { %124 = vst.msk [vmem:[#allocation0] sm:$0x1] %vm123_vm4, %v122_v51  }
  0x9c   :  { %v128_v52 = vpop.permute.xlu0 %127   ;;  %v134_v53 = vpop.permute.xlu1 %133  }
  0x9d   :  { %130 = vst.msk [vmem:[#allocation0] sm:$0x1] %vm129_vm5, %v128_v52  }
  0x9e   :  { %136 = vst.msk [vmem:[#allocation0] sm:$0x1] %vm135_vm6, %v134_v53  }
  0xa0   :  { %v140_v54 = vpop.permute.xlu0 %139   ;;  %v146_v55 = vpop.permute.xlu1 %145  }
  0xa1   :  { %142 = vst.msk [vmem:[#allocation0] sm:$0x1] %vm141_vm7, %v140_v54  }
  0xa2   :  { %148 = vst.msk [vmem:[#allocation0] sm:$0x1] %vm147_vm8, %v146_v55  }
  0xa4   :  { %v152_v56 = vpop.permute.xlu0 %151   ;;  %v158_v57 = vpop.permute.xlu1 %157  }
  0xa5   :  { %154 = vst.msk [vmem:[#allocation0] sm:$0x1] %vm153_vm9, %v152_v56  }
  0xa6   :  { %160 = vst.msk [vmem:[#allocation0] sm:$0x1] %vm159_vm10, %v158_v57  }
  0xa8   :  { %v164_v58 = vpop.permute.xlu0 %163   ;;  %v170_v59 = vpop.permute.xlu1 %169  }
  0xa9   :  { %166 = vst.msk [vmem:[#allocation0] sm:$0x1] %vm165_vm11, %v164_v58  }
  0xaa   :  { %172 = vst.msk [vmem:[#allocation0] sm:$0x1] %vm171_vm12, %v170_v59  }
  0xac   :  { %v176_v60 = vpop.permute.xlu0 %175   ;;  %v182_v61 = vpop.permute.xlu1 %181  }
  0xad   :  { %178 = vst.msk [vmem:[#allocation0] sm:$0x1] %vm177_vm13, %v176_v60  }
  0xae   :  { %184 = vst.msk [vmem:[#allocation0] sm:$0x1] %vm183_vm14, %v182_v61  }
  0xb0   :  { %v188_v62 = vpop.permute.xlu0 %187  }
  0xb1   :  { %190 = vst.msk [vmem:[#allocation0] sm:$0x1] %vm189_vm15, %v188_v62  }
  0xb8   :  { %v194_v63 = vld [vmem:[#allocation0] sm:$0x1] }
  0xb9   :  { %196 = vst [vmem:[%s400_s1] sm:$0x1] %v194_v63 }

// kernel: modrelu_forward.1
= control target key start
LH: loop header
LB: loop body
LE: loop exit
PB: predicated region body
PF: predicated region fallthrough
CT: control target
= control target key end

     0   :  { %v16_v0 = vlaneseq  ;;  %v643_v2 = vmov 1983009808   ;;  %s644_s13 = smov 127   ;;  %s646_s14 = smov 126   ;;  %s948_s0 = inlined_call_operand.vmem [shape: f32[2,1024], index: 0, kind: input, shape index: {}]   ;;  %s949_s1 = inlined_call_operand.vmem [shape: f32[1,1024], index: 1, kind: input, shape index: {}]   ;;  %s950_s2 = inlined_call_operand.vmem [shape: f32[2,1024], index: 2, kind: output, shape index: {}]  }
   0x1   :  { %v666_v1 = vld [vmem:[%s948_s0] sm:$0xff]  ;;  %v29_v3 = vunpack.c.l.s4 %v643_v2  ;;  %v677_v6 = vld [vmem:[%s948_s0 + $0x8] sm:$0xff]  ;;  %s645_s0 = smov 1   ;;  %s647_s15 = smov 2  }
   0x2   :  { %v670_v4 = vmul.f32 %v666_v1, %v666_v1  ;;  %v672_v5 = vshrl.u32 %v16_v0, 7  ;;  %v686_v10 = vmul.f32 %v677_v6, %v677_v6  ;;  %v696_v26 = vand.u32 127, %v16_v0 }
   0x3   :  { %v30_v7 = vunpack.c.0.s8 %v29_v3 }
   0x4   :  { %v27_v8 = vcombine.high %v670_v4, %v670_v4  ;;  %v44_v15 = vcombine.high %v686_v10, %v686_v10  ;;  %v699_v29 = vadd.s32 256, %v696_v26  ;;  %v702_v30 = vadd.s32 384, %v696_v26 }
   0x5   :  { %v682_v9 = vsub.s32 %v30_v7, %v672_v5  ;;  %v705_v31 = vadd.s32 512, %v696_v26  ;;  %v708_v32 = vadd.s32 640, %v696_v26  ;;  %v711_v35 = vadd.s32 128, %v696_v26 }
   0x6   :  { %v137_v36 = vand.u32 1, %v699_v29  ;;  %v144_v37 = vand.u32 1, %v702_v30  ;;  %v716_v38 = vadd.s32 768, %v696_v26  ;;  %v721_v41 = vadd.s32 896, %v696_v26 }
   0x7   :  { %v34_v11 = vrot.slane %v670_v4, %v682_v9  ;;  %v41_v12 = vrot.slane %v27_v8, %v682_v9  ;;  %v51_v13 = vrot.slane %v686_v10, %v682_v9  ;;  %v58_v18 = vrot.slane %v44_v15, %v682_v9 }
   0x8   :  { %v151_v39 = vand.u32 1, %v705_v31  ;;  %v158_v40 = vand.u32 1, %v708_v32  ;;  %vm85_vm0 = vcmp.lt.s32.totalorder %v696_v26, 127  ;;  %vm110_vm1 = vcmp.lt.s32.totalorder %v696_v26, 1 }
   0x9   :  { %69 = vrot.lane.b32.xlu0 %v34_v11, %s644_s13  ;;  %73 = vrot.lane.b32.xlu1 %v41_v12, %s644_s13  ;;  %v43_v14 = vcombine.high %v41_v12, %v41_v12  ;;  %v42_v16 = vcombine.high %v34_v11, %v34_v11  ;;  %v59_v17 = vcombine.high %v51_v13, %v51_v13  ;;  %v130_v44 = vand.u32 1, %v711_v35 }
   0xa   :  { %v60_v19 = vcombine.high %v58_v18, %v58_v18  ;;  %vm726_vm2 = vcmp.lt.s32.totalorder %v137_v36, 1  ;;  %vm732_vm3 = vcmp.lt.s32.totalorder %v144_v37, 1  ;;  %v165_v49 = vand.u32 1, %v716_v38 }
   0xb   :  { %vm739_vm4 = vcmp.lt.s32.totalorder %v151_v39, 1  ;;  %vm743_vm5 = vcmp.lt.s32.totalorder %v158_v40, 1  ;;  %v123_v52 = vand.u32 1, %v696_v26  ;;  %v172_v53 = vand.u32 1, %v721_v41 }
   0xc   :  { %vm765_vm6 = vcmp.lt.s32.totalorder %v130_v44, 1  ;;  %vm773_vm7 = vcmp.lt.s32.totalorder %v165_v49, 1  ;;  %v382_v0 = vand.u32 3, %v711_v35  ;;  %v389_v7 = vand.u32 3, %v699_v29 }
   0xd   :  { %77 = vrot.lane.b32.xlu0 %v51_v13, %s644_s13  ;;  %75 = vrot.lane.b32.xlu1 %v43_v14, %s644_s13  ;;  %vm781_vm8 = vcmp.lt.s32.totalorder %v123_v52, 1  ;;  %vm785_vm9 = vcmp.lt.s32.totalorder %v172_v53, 1  ;;  %vm337_vm10 = vcmp.lt.s32.totalorder %v696_v26, 126  ;;  %vm362_vm11 = vcmp.lt.s32.totalorder %v696_v26, 2 }
   0xe   :  { %vm839_vm12 = vcmp.lt.s32.totalorder %v382_v0, 2  ;;  %vm847_vm14 = vcmp.lt.s32.totalorder %v389_v7, 2  ;;  %v546_v0 = vsub.s32 0, %v672_v5  ;;  %v554_v7 = vsub.s32 2, %v672_v5 }
  0x11   :  { %71 = vrot.lane.b32.xlu0 %v42_v16, %s644_s13  ;;  %79 = vrot.lane.b32.xlu1 %v59_v17, %s644_s13 }
  0x15   :  { %81 = vrot.lane.b32.xlu0 %v58_v18, %s644_s13  ;;  %83 = vrot.lane.b32.xlu1 %v60_v19, %s644_s13 }
  0x19   :  { %94 = vrot.lane.b32.xlu0 %v34_v11, %s645_s0  ;;  %96 = vrot.lane.b32.xlu1 %v42_v16, %s645_s0 }
  0x1d   :  { %98 = vrot.lane.b32.xlu0 %v41_v12, %s645_s0  ;;  %100 = vrot.lane.b32.xlu1 %v43_v14, %s645_s0  ;;  %v417_v12 = vand.u32 3, %v716_v38 }
  0x21   :  { %102 = vrot.lane.b32.xlu0 %v51_v13, %s645_s0  ;;  %104 = vrot.lane.b32.xlu1 %v59_v17, %s645_s0 }
  0x25   :  { %106 = vrot.lane.b32.xlu0 %v58_v18, %s645_s0  ;;  %108 = vrot.lane.b32.xlu1 %v60_v19, %s645_s0 }
  0x7b   :  { %v70_v20 = vpop.permute.xlu0 %69  ;;  %v74_v21 = vpop.permute.xlu1 %73 }
  0x7f   :  { %v78_v22 = vpop.permute.xlu0 %77  ;;  %v76_v23 = vpop.permute.xlu1 %75 }
  0x80   :  { %v89_v54 = vsel %vm85_vm0, %v76_v23, %v78_v22  ;;  %v90_v55 = vsel %vm85_vm0, %v74_v21, %v76_v23 }
  0x83   :  { %v72_v24 = vpop.permute.xlu0 %71  ;;  %v80_v25 = vpop.permute.xlu1 %79 }
  0x84   :  { %v88_v56 = vsel %vm85_vm0, %v78_v22, %v80_v25  ;;  %v91_v8 = vsel %vm85_vm0, %v72_v24, %v74_v21  ;;  %v92_v14 = vsel %vm85_vm0, %v70_v20, %v72_v24 }
  0x87   :  { %v82_v27 = vpop.permute.xlu0 %81  ;;  %v84_v28 = vpop.permute.xlu1 %83 }
  0x88   :  { %v87_v57 = vsel %vm85_vm0, %v80_v25, %v82_v27  ;;  %v86_v15 = vsel %vm85_vm0, %v82_v27, %v84_v28  ;;  %v93_v16 = vsel %vm85_vm0, %v84_v28, %v70_v20 }
  0x8b   :  { %v95_v33 = vpop.permute.xlu0 %94  ;;  %v97_v34 = vpop.permute.xlu1 %96 }
  0x8c   :  { %v117_v11 = vsel %vm110_vm1, %v95_v33, %v97_v34 }
  0x8d   :  { %v224_v24 = vsel %vm765_vm6, %v91_v8, %v117_v11  ;;  %v396_v8 = vand.u32 3, %v702_v30  ;;  %v403_v11 = vand.u32 3, %v705_v31 }
  0x8f   :  { %v99_v42 = vpop.permute.xlu0 %98  ;;  %v101_v43 = vpop.permute.xlu1 %100  ;;  %vm851_vm15 = vcmp.lt.s32.totalorder %v396_v8, 2  ;;  %vm855_vm0 = vcmp.lt.s32.totalorder %v403_v11, 2  ;;  %v558_v8 = vsub.s32 3, %v672_v5  ;;  %v562_v11 = vsub.s32 4, %v672_v5 }
  0x90   :  { %v116_v46 = vsel %vm110_vm1, %v97_v34, %v99_v42  ;;  %v115_v48 = vsel %vm110_vm1, %v99_v42, %v101_v43 }
  0x91   :  { %v225_v60 = vsel %vm726_vm2, %v90_v55, %v116_v46  ;;  %v226_v61 = vsel %vm732_vm3, %v89_v54, %v115_v48 }
  0x92   :  { %v240_v17 = vcombine.low %v225_v60, %v226_v61 }
  0x93   :  { %v103_v58 = vpop.permute.xlu0 %102  ;;  %v105_v59 = vpop.permute.xlu1 %104 }
  0x94   :  { %v114_v62 = vsel %vm110_vm1, %v101_v43, %v103_v58  ;;  %v113_v63 = vsel %vm110_vm1, %v103_v58, %v105_v59  ;;  %v254_v37 = vrot.slane %v240_v17, %v682_v9 }
  0x95   :  { %v227_v2 = vsel %vm739_vm4, %v88_v56, %v114_v62  ;;  %v228_v3 = vsel %vm743_vm5, %v87_v57, %v113_v63 }
  0x96   :  { %v256_v21 = vcombine.low %v227_v2, %v228_v3  ;;  %v410_v2 = vand.u32 3, %v708_v32 }
  0x97   :  { %v107_v18 = vpop.permute.xlu0 %106  ;;  %v109_v19 = vpop.permute.xlu1 %108 }
  0x98   :  { %v112_v22 = vsel %vm110_vm1, %v105_v59, %v107_v18  ;;  %v111_v23 = vsel %vm110_vm1, %v107_v18, %v109_v19  ;;  %v118_v25 = vsel %vm110_vm1, %v109_v19, %v95_v33  ;;  %v264_v39 = vrot.slane %v256_v21, %v682_v9 }
  0x99   :  { %v229_v27 = vsel %vm773_vm7, %v86_v15, %v112_v22  ;;  %v223_v20 = vsel %vm781_vm8, %v92_v14, %v118_v25  ;;  %v230_v28 = vsel %vm785_vm9, %v93_v16, %v111_v23  ;;  %v375_v14 = vand.u32 3, %v696_v26 }
  0x9a   :  { %v239_v34 = vcombine.low %v223_v20, %v224_v24  ;;  %v257_v36 = vcombine.low %v229_v27, %v230_v28  ;;  %v424_v15 = vand.u32 3, %v721_v41  ;;  %vm843_vm13 = vcmp.lt.s32.totalorder %v410_v2, 2 }
  0x9b   :  { %vm859_vm1 = vcmp.lt.s32.totalorder %v417_v12, 2  ;;  %vm867_vm2 = vcmp.lt.s32.totalorder %v375_v14, 2  ;;  %v550_v2 = vsub.s32 1, %v672_v5  ;;  %v574_v12 = vsub.s32 7, %v672_v5 }
  0x9c   :  { %v247_v33 = vrot.slane %v239_v34, %v682_v9  ;;  %v271_v40 = vrot.slane %v257_v36, %v682_v9  ;;  %vm871_vm3 = vcmp.lt.s32.totalorder %v424_v15, 2 }
  0x9e   :  { %v255_v42 = vcombine.low %v247_v33, %v254_v37  ;;  %v272_v43 = vcombine.low %v264_v39, %v271_v40 }
  0xa0   :  { %v814_v44 = vadd.f32 %v255_v42, %v670_v4  ;;  %v817_v45 = vadd.f32 %v272_v43, %v686_v10 }
  0xa2   :  { %v286_v46 = vrot.slane %v814_v44, %v682_v9  ;;  %v303_v48 = vrot.slane %v817_v45, %v682_v9  ;;  %v279_v4 = vcombine.high %v814_v44, %v814_v44  ;;  %v296_v50 = vcombine.high %v817_v45, %v817_v45 }
  0xa4   :  { %321 = vrot.lane.b32.xlu0 %v286_v46, %s646_s14  ;;  %v294_v47 = vcombine.high %v286_v46, %v286_v46  ;;  %v311_v49 = vcombine.high %v303_v48, %v303_v48  ;;  %v293_v10 = vrot.slane %v279_v4, %v682_v9  ;;  %v310_v52 = vrot.slane %v296_v50, %v682_v9 }
  0xa6   :  { %323 = vrot.lane.b32.xlu1 %v294_v47, %s646_s14  ;;  %v295_v51 = vcombine.high %v293_v10, %v293_v10  ;;  %v312_v53 = vcombine.high %v310_v52, %v310_v52 }
  0xa8   :  { %329 = vrot.lane.b32.xlu0 %v303_v48, %s646_s14 }
  0xaa   :  { %331 = vrot.lane.b32.xlu1 %v311_v49, %s646_s14 }
  0xac   :  { %346 = vrot.lane.b32.xlu0 %v286_v46, %s647_s15 }
  0xae   :  { %348 = vrot.lane.b32.xlu1 %v294_v47, %s647_s15 }
  0xb0   :  { %354 = vrot.lane.b32.xlu0 %v303_v48, %s647_s15 }
  0xb2   :  { %356 = vrot.lane.b32.xlu1 %v311_v49, %s647_s15 }
  0xb4   :  { %325 = vrot.lane.b32.xlu0 %v293_v10, %s646_s14 }
  0xb6   :  { %327 = vrot.lane.b32.xlu1 %v295_v51, %s646_s14 }
  0xb8   :  { %333 = vrot.lane.b32.xlu0 %v310_v52, %s646_s14 }
  0xba   :  { %335 = vrot.lane.b32.xlu1 %v312_v53, %s646_s14 }
  0xbc   :  { %350 = vrot.lane.b32.xlu0 %v293_v10, %s647_s15 }
  0xbe   :  { %352 = vrot.lane.b32.xlu1 %v295_v51, %s647_s15 }
  0xc0   :  { %358 = vrot.lane.b32.xlu0 %v310_v52, %s647_s15 }
  0xc2   :  { %360 = vrot.lane.b32.xlu1 %v312_v53, %s647_s15 }
 0x116   :  { %v322_v54 = vpop.permute.xlu0 %321 }
 0x118   :  { %v324_v55 = vpop.permute.xlu1 %323 }
 0x119   :  { %v344_v27 = vsel %vm337_vm10, %v322_v54, %v324_v55 }
 0x11a   :  { %v330_v56 = vpop.permute.xlu0 %329 }
 0x11c   :  { %v332_v57 = vpop.permute.xlu1 %331 }
 0x11d   :  { %v340_v16 = vsel %vm337_vm10, %v330_v56, %v332_v57 }
 0x11e   :  { %v347_v58 = vpop.permute.xlu0 %346 }
 0x120   :  { %v349_v59 = vpop.permute.xlu1 %348 }
 0x121   :  { %v369_v20 = vsel %vm362_vm11, %v347_v58, %v349_v59 }
 0x122   :  { %v355_v60 = vpop.permute.xlu0 %354 }
 0x124   :  { %v357_v61 = vpop.permute.xlu1 %356 }
 0x125   :  { %v365_v37 = vsel %vm362_vm11, %v355_v60, %v357_v61 }
 0x126   :  { %v326_v62 = vpop.permute.xlu0 %325 }
 0x127   :  { %v343_v39 = vsel %vm337_vm10, %v324_v55, %v326_v62 }
 0x128   :  { %v328_v63 = vpop.permute.xlu1 %327  ;;  %v476_v51 = vsel %vm839_vm12, %v343_v39, %v369_v20 }
 0x129   :  { %v341_v17 = vsel %vm337_vm10, %v328_v63, %v330_v56  ;;  %v342_v33 = vsel %vm337_vm10, %v326_v62, %v328_v63 }
 0x12a   :  { %v334_v3 = vpop.permute.xlu0 %333 }
 0x12b   :  { %v339_v22 = vsel %vm337_vm10, %v332_v57, %v334_v3 }
 0x12c   :  { %v336_v13 = vpop.permute.xlu1 %335  ;;  %v480_v42 = vsel %vm843_vm13, %v339_v22, %v365_v37 }
 0x12d   :  { %v338_v43 = vsel %vm337_vm10, %v334_v3, %v336_v13  ;;  %v345_v46 = vsel %vm337_vm10, %v336_v13, %v322_v54  ;;  %v13_v3 = vld [vmem:[%s949_s1] sm:$0xff] }
 0x12e   :  { %v351_v30 = vpop.permute.xlu0 %350  ;;  %v547_v13 = vrot.slane %v13_v3, %v546_v0  ;;  %v551_v14 = vrot.slane %v13_v3, %v550_v2  ;;  %v555_v15 = vrot.slane %v13_v3, %v554_v7  ;;  %v559_v32 = vrot.slane %v13_v3, %v558_v8 }
 0x12f   :  { %v368_v23 = vsel %vm362_vm11, %v349_v59, %v351_v30  ;;  %v563_v29 = vrot.slane %v13_v3, %v562_v11  ;;  %v575_v35 = vrot.slane %v13_v3, %v574_v12 }
 0x130   :  { %v353_v18 = vpop.permute.xlu1 %352  ;;  %v477_v47 = vsel %vm847_vm14, %v342_v33, %v368_v23  ;;  %v576_v38 = vcombine.low %v547_v13, %v551_v14 }
 0x131   :  { %v366_v25 = vsel %vm362_vm11, %v353_v18, %v355_v60  ;;  %v367_v24 = vsel %vm362_vm11, %v351_v30, %v353_v18 }
 0x132   :  { %v478_v28 = vsel %vm851_vm15, %v341_v17, %v367_v24  ;;  %v479_v34 = vsel %vm855_vm0, %v340_v16, %v366_v25  ;;  %v359_v36 = vpop.permute.xlu0 %358  ;;  %v577_v16 = vcombine.low %v555_v15, %v559_v32  ;;  %v584_v22 = vrot.slane %v576_v38, %v682_v9 }
 0x133   :  { %v364_v40 = vsel %vm362_vm11, %v357_v61, %v359_v36  ;;  %v492_v49 = vcombine.low %v477_v47, %v478_v28  ;;  %v508_v4 = vcombine.low %v479_v34, %v480_v42 }
 0x134   :  { %v361_v48 = vpop.permute.xlu1 %360  ;;  %v481_v52 = vsel %vm859_vm1, %v338_v43, %v364_v40 }
 0x135   :  { %v363_v10 = vsel %vm362_vm11, %v359_v36, %v361_v48  ;;  %v370_v50 = vsel %vm362_vm11, %v361_v48, %v347_v58  ;;  %v506_v57 = vrot.slane %v492_v49, %v682_v9  ;;  %v516_v59 = vrot.slane %v508_v4, %v682_v9 }
 0x136   :  { %v475_v53 = vsel %vm867_vm2, %v344_v27, %v370_v50  ;;  %v482_v54 = vsel %vm871_vm3, %v345_v46, %v363_v10  ;;  %v591_v27 = vrot.slane %v577_v16, %v682_v9 }
 0x137   :  { %v491_v55 = vcombine.low %v475_v53, %v476_v51  ;;  %v509_v56 = vcombine.low %v481_v52, %v482_v54 }
 0x138   :  { %v592_v40 = vcombine.low %v584_v22, %v591_v27 }
 0x139   :  { %v499_v26 = vrot.slane %v491_v55, %v682_v9  ;;  %v523_v58 = vrot.slane %v509_v56, %v682_v9 }
 0x13b   :  { %v507_v60 = vcombine.low %v499_v26, %v506_v57  ;;  %v524_v61 = vcombine.low %v516_v59, %v523_v58 }
 0x13d   :  { %v527_v62 = vadd.f32 %v507_v60, %v814_v44  ;;  %v528_v63 = vadd.f32 %v524_v61, %v817_v45  ;;  %v566_v44 = vsub.s32 5, %v672_v5  ;;  %v570_v45 = vsub.s32 6, %v672_v5 }
 0x13f   :  { %635 = vrsqrt.f32 %v527_v62  ;;  %v567_v30 = vrot.slane %v13_v3, %v566_v44  ;;  %v571_v31 = vrot.slane %v13_v3, %v570_v45  ;;  %vm531_vm4 = vcmp.eq.f32.partialorder %v527_v62, inf }
 0x140   :  { %637 = vrsqrt.f32 %v528_v63  ;;  %v534_v23 = vand.u32 2147483648, %v527_v62  ;;  %vm533_vm5 = vcmp.eq.f32.partialorder %v527_v62, 0.0  ;;  %vm538_vm6 = vcmp.eq.f32.partialorder %v528_v63, inf }
 0x141   :  { %v593_v18 = vcombine.low %v563_v29, %v567_v30  ;;  %v594_v19 = vcombine.low %v571_v31, %v575_v35  ;;  %v541_v24 = vand.u32 2147483648, %v528_v63  ;;  %vm540_vm7 = vcmp.eq.f32.partialorder %v528_v63, 0.0 }
 0x143   :  { %v601_v34 = vrot.slane %v593_v18, %v682_v9  ;;  %v608_v36 = vrot.slane %v594_v19, %v682_v9 }
 0x145   :  { %v609_v42 = vcombine.low %v601_v34, %v608_v36 }
 0x149   :  { %v636_v41 = vpop.eup %635 }
 0x14a   :  { %v638_v17 = vpop.eup %637  ;;  %v530_v21 = vmul.f32 %v636_v41, %v527_v62 }
 0x14b   :  { %v537_v5 = vmul.f32 %v638_v17, %v528_v63 }
 0x14c   :  { %v532_v25 = vsel %vm531_vm4, %v527_v62, %v530_v21 }
 0x14d   :  { %v535_v20 = vsel %vm533_vm5, %v534_v23, %v532_v25  ;;  %v539_v28 = vsel %vm538_vm6, %v528_v63, %v537_v5 }
 0x14e   :  { %v542_v37 = vsel %vm540_vm7, %v541_v24, %v539_v28  ;;  %v616_v39 = vadd.f32 1e-06, %v535_v20  ;;  %v612_v43 = vadd.f32 %v592_v40, %v535_v20 }
 0x14f   :  { %v617_v33 = vadd.f32 1e-06, %v542_v37  ;;  %v613_v46 = vadd.f32 %v609_v42, %v542_v37 }
 0x150   :  { %639 = vrcp.f32 %v616_v39  ;;  %v614_v47 = vmax.f32 %v612_v43, 0.0 }
 0x151   :  { %641 = vrcp.f32 %v617_v33  ;;  %v615_v49 = vmax.f32 %v613_v46, 0.0 }
 0x15a   :  { %v640_v48 = vpop.eup %639 }
 0x15b   :  { %v642_v4 = vpop.eup %641  ;;  %v619_v10 = vmul.f32 %v640_v48, %v614_v47 }
 0x15c   :  { %v621_v50 = vmul.f32 %v642_v4, %v615_v49 }
 0x15d   :  { %v622_v51 = vmul.f32 %v619_v10, %v666_v1 }
 0x15e   :  { %v623_v52 = vmul.f32 %v621_v50, %v677_v6 }
 0x15f   :  { %624 = vst [vmem:[%s950_s2] sm:$0xff] %v622_v51 }
 0x160   :  { %625 = vst [vmem:[%s950_s2 + $0x8] sm:$0xff] %v623_v52 }

</bundles_post_ra>
